<compile_context>
chip_gen: v7x
topology: tpu7x:2x2x1
jax: 0.10.0
libtpu: 0.0.40
codegen_flags: <defaults>
</compile_context>

<pallas_src>
import jax
import jax.numpy as jnp
from jax import lax
from jax.experimental import pallas as pl
from jax.experimental.pallas import tpu as pltpu

RES_SCALE = 1.0
KSIZE = 3


def make_resblock_kernel(H, W, C, Ce, Cmp, Nb):
    HW = H * W

    def kernel(x_ref, m_ref, w1_ref, b1_ref, w2_ref, b2_ref, w3_ref, b3_ref,
               o_ref):
        # Weights / biases / masks: loaded once and reused for every image in
        # the batch block (all VMEM-resident via constant index_maps).
        w1 = w1_ref[...]
        b1 = b1_ref[...]
        w2 = w2_ref[...]
        b2 = b2_ref[...]
        w3 = w3_ref[...]
        b3 = b3_ref[...]
        masks = [m_ref[pl.ds(k, 1), :] for k in range(KSIZE * KSIZE)]

        for b in range(Nb):                 # unrolled: Nb is small and static
            x = x_ref[b]                                          # (C, HW) f32

            # conv1: 1x1, C -> Ce, bias, ReLU  (single MXU matmul)
            y1 = jnp.dot(w1, x, preferred_element_type=jnp.float32)
            y1 = jnp.maximum(y1 + b1, 0.0)                        # (Ce, HW)

            # conv2_1: 1x1, Ce -> Cm (padded to Cmp), bias
            y2 = jnp.dot(w2, y1, preferred_element_type=jnp.float32) + b2

            # conv2_2: 3x3, zero pad 1.  im2col in registers: nine lane-rolled
            # copies of y2, invalid border lanes zeroed with the precomputed
            # masks, stacked along the contraction axis at sublane-aligned
            # offsets, then ONE matmul against the (C, 9*Cmp) weight.
            pieces = []
            k = 0
            for kh in range(KSIZE):
                dh = kh - (KSIZE // 2)
                for kw in range(KSIZE):
                    dw = kw - (KSIZE // 2)
                    d = dh * W + dw
                    if d == 0:
                        pieces.append(y2)             # centre tap: mask is 1s
                    else:
                        shifted = pltpu.roll(y2, (-d) % HW, axis=1)
                        pieces.append(shifted * masks[k])
                    k += 1
            imcol = jnp.concatenate(pieces, axis=0)               # (9*Cmp, HW)

            y3 = jnp.dot(w3, imcol, preferred_element_type=jnp.float32) + b3

            res = y3 if RES_SCALE == 1.0 else y3 * RES_SCALE
            o_ref[b] = (res + x).astype(o_ref.dtype)

    return kernel


def _make_border_masks(H, W):
    """(9, H*W) f32 validity masks for the 3x3 zero-padded taps (kh, kw order)."""
    r = jnp.arange(H, dtype=jnp.int32)[:, None]
    c = jnp.arange(W, dtype=jnp.int32)[None, :]
    rows = []
    for kh in range(KSIZE):
        dh = kh - KSIZE // 2
        for kw in range(KSIZE):
            dw = kw - KSIZE // 2
            ok = ((r + dh >= 0) & (r + dh < H) & (c + dw >= 0) & (c + dw < W))
            rows.append(ok.reshape(-1))
    return jnp.stack(rows).astype(jnp.float32)


def _pick_batch_block(N, max_nb=8):
    nb = min(N, max_nb)
    while N % nb:
        nb -= 1
    return nb


def residual_block_b(x_nchw, params):
    """x_nchw: (N, C, H, W) float32.

    params (PyTorch-style):
      w1 (Ce, C)         == conv1.weight[:, :, 0, 0]
      b1 (Ce,)
      w2 (Cm, Ce)        == conv2_1.weight[:, :, 0, 0]
      b2 (Cm,)
      w3 (C, Cm, 3, 3)   == conv2_2.weight (OIHW)
      b3 (C,)
    """
    w1, b1, w2, b2, w3, b3 = params
    N, C, H, W = x_nchw.shape
    Ce = w1.shape[0]
    Cm = w2.shape[0]
    Cmp = ((Cm + 7) // 8) * 8   # pad Cm to a sublane multiple -> aligned im2col
    HW = H * W
    Nb = _pick_batch_block(N)   # whole batch in one grid step at this size

    # Free layout prep: reshape only, no activation transposes.
    x = x_nchw.reshape(N, C, HW)

    # Tiny one-time host-side prep (fused by XLA around the call).
    masks = _make_border_masks(H, W)                               # (9, HW)
    w2p = jnp.zeros((Cmp, Ce), w2.dtype).at[:Cm, :].set(w2)
    b2p = jnp.zeros((Cmp, 1), b2.dtype).at[:Cm, 0].set(b2)
    # w3 OIHW (C, Cm, 3, 3) -> (C, kh, kw, m_padded) -> (C, 9*Cmp), matching the
    # (kh, kw, m) row order of the in-kernel im2col matrix.
    w3p = jnp.zeros((C, KSIZE, KSIZE, Cmp), w3.dtype)
    w3p = w3p.at[:, :, :, :Cm].set(jnp.transpose(w3, (0, 2, 3, 1)))
    w3r = w3p.reshape(C, KSIZE * KSIZE * Cmp)

    flops = 2 * N * HW * (C * Ce + Ce * Cmp + KSIZE * KSIZE * Cmp * C)
    bytes_accessed = 4 * (2 * N * C * HW + masks.size + w1.size + w2p.size
                          + w3r.size + Ce + Cmp + C)

    out = pl.pallas_call(
        make_resblock_kernel(H, W, C, Ce, Cmp, Nb),
        out_shape=jax.ShapeDtypeStruct((N, C, HW), x.dtype),
        grid_spec=pltpu.PrefetchScalarGridSpec(
            num_scalar_prefetch=0,
            grid=(N // Nb,),
            in_specs=[
                pl.BlockSpec((Nb, C, HW), lambda b: (b, 0, 0)),
                pl.BlockSpec((KSIZE * KSIZE, HW), lambda b: (0, 0)),
                pl.BlockSpec((Ce, C), lambda b: (0, 0)),
                pl.BlockSpec((Ce, 1), lambda b: (0, 0)),
                pl.BlockSpec((Cmp, Ce), lambda b: (0, 0)),
                pl.BlockSpec((Cmp, 1), lambda b: (0, 0)),
                pl.BlockSpec((C, KSIZE * KSIZE * Cmp), lambda b: (0, 0)),
                pl.BlockSpec((C, 1), lambda b: (0, 0)),
            ],
            out_specs=pl.BlockSpec((Nb, C, HW), lambda b: (b, 0, 0)),
        ),
        compiler_params=pltpu.CompilerParams(
            dimension_semantics=("parallel",)),
        cost_estimate=pl.CostEstimate(flops=flops, transcendentals=0,
                                      bytes_accessed=bytes_accessed),
    )(x, masks, w1, b1.reshape(Ce, 1), w2p, b2p, w3r, b3.reshape(C, 1))

    return out.reshape(N, C, H, W)


def reference(x_nchw, params):
    """Pure-JAX reference matching the PyTorch forward semantics (NCHW/OIHW)."""
    w1, b1, w2, b2, w3, b3 = params
    dn = ('NCHW', 'OIHW', 'NCHW')
    y1 = jax.nn.relu(
        lax.conv_general_dilated(x_nchw, w1[:, :, None, None], (1, 1), 'VALID',
                                 dimension_numbers=dn)
        + b1[None, :, None, None])
    y2 = lax.conv_general_dilated(y1, w2[:, :, None, None], (1, 1), 'VALID',
                                  dimension_numbers=dn) + b2[None, :, None, None]
    y3 = lax.conv_general_dilated(y2, w3, (1, 1), ((1, 1), (1, 1)),
                                  dimension_numbers=dn) + b3[None, :, None, None]
    return y3 * RES_SCALE + x_nchw


if __name__ == "__main__":
    N, C, H, W = 2, 8, 16, 16
    expand, linear = 3, 0.8
    Ce = C * expand            # 24
    Cm = int(C * linear)       # 6

    key = jax.random.PRNGKey(0)
    ks = jax.random.split(key, 7)
    scale = 0.1
    w1 = jax.random.normal(ks[0], (Ce, C), jnp.float32) * scale
    b1 = jax.random.normal(ks[1], (Ce,), jnp.float32) * scale
    w2 = jax.random.normal(ks[2], (Cm, Ce), jnp.float32) * scale
    b2 = jax.random.normal(ks[3], (Cm,), jnp.float32) * scale
    w3 = jax.random.normal(ks[4], (C, Cm, KSIZE, KSIZE), jnp.float32) * scale
    b3 = jax.random.normal(ks[5], (C,), jnp.float32) * scale
    params = (w1, b1, w2, b2, w3, b3)

    x = jax.random.normal(ks[6], (N, C, H, W), jnp.float32)

    out = jax.block_until_ready(residual_block_b(x, params))
    ref = jax.block_until_ready(reference(x, params))

    assert out.shape == x.shape and out.dtype == x.dtype
    max_err = float(jnp.max(jnp.abs(out - ref)))
    assert max_err < 1e-4, f"mismatch vs reference: {max_err}"
    print("KERNEL_OK")
</pallas_src>

<mosaic_0001>
module attributes {stable_mosaic.version = 11 : i64} {
  func.func @kernel(%arg0: i32, %arg1: memref<2x8x256xf32, #tpu.memory_space<vmem>>, %arg2: memref<9x256xf32, #tpu.memory_space<vmem>>, %arg3: memref<24x8xf32, #tpu.memory_space<vmem>>, %arg4: memref<24x1xf32, #tpu.memory_space<vmem>>, %arg5: memref<8x24xf32, #tpu.memory_space<vmem>>, %arg6: memref<8x1xf32, #tpu.memory_space<vmem>>, %arg7: memref<8x72xf32, #tpu.memory_space<vmem>>, %arg8: memref<8x1xf32, #tpu.memory_space<vmem>>, %arg9: memref<2x8x256xf32, #tpu.memory_space<vmem>>) attributes {dimension_semantics = [#tpu.dimension_semantics<parallel>], iteration_bounds = array<i64: 1>, scalar_prefetch = 0 : i64, scratch_operands = 0 : i64, tpu.core_type = #tpu.core_type<tc>, window_params = [{transform_indices = @transform_0, window_bounds = array<i64: 2, 8, 256>}, {pipeline_mode = #tpu.pipeline_mode<synchronous>, transform_indices = @transform_1, window_bounds = array<i64: 9, 256>}, {pipeline_mode = #tpu.pipeline_mode<synchronous>, transform_indices = @transform_2, window_bounds = array<i64: 24, 8>}, {pipeline_mode = #tpu.pipeline_mode<synchronous>, transform_indices = @transform_3, window_bounds = array<i64: 24, 1>}, {pipeline_mode = #tpu.pipeline_mode<synchronous>, transform_indices = @transform_4, window_bounds = array<i64: 8, 24>}, {pipeline_mode = #tpu.pipeline_mode<synchronous>, transform_indices = @transform_5, window_bounds = array<i64: 8, 1>}, {pipeline_mode = #tpu.pipeline_mode<synchronous>, transform_indices = @transform_6, window_bounds = array<i64: 8, 72>}, {pipeline_mode = #tpu.pipeline_mode<synchronous>, transform_indices = @transform_7, window_bounds = array<i64: 8, 1>}, {transform_indices = @transform_8, window_bounds = array<i64: 2, 8, 256>}]} {
    %c0 = arith.constant 0 : index
    %c0_0 = arith.constant 0 : index
    %0 = vector.load %arg3[%c0, %c0_0] : memref<24x8xf32, #tpu.memory_space<vmem>>, vector<24x8xf32>
    %c0_1 = arith.constant 0 : index
    %c0_2 = arith.constant 0 : index
    %1 = vector.load %arg4[%c0_1, %c0_2] : memref<24x1xf32, #tpu.memory_space<vmem>>, vector<24x1xf32>
    %c0_3 = arith.constant 0 : index
    %c0_4 = arith.constant 0 : index
    %2 = vector.load %arg5[%c0_3, %c0_4] : memref<8x24xf32, #tpu.memory_space<vmem>>, vector<8x24xf32>
    %c0_5 = arith.constant 0 : index
    %c0_6 = arith.constant 0 : index
    %3 = vector.load %arg6[%c0_5, %c0_6] : memref<8x1xf32, #tpu.memory_space<vmem>>, vector<8x1xf32>
    %c0_7 = arith.constant 0 : index
    %c0_8 = arith.constant 0 : index
    %4 = vector.load %arg7[%c0_7, %c0_8] : memref<8x72xf32, #tpu.memory_space<vmem>>, vector<8x72xf32>
    %c0_9 = arith.constant 0 : index
    %c0_10 = arith.constant 0 : index
    %5 = vector.load %arg8[%c0_9, %c0_10] : memref<8x1xf32, #tpu.memory_space<vmem>>, vector<8x1xf32>
    %c0_11 = arith.constant 0 : index
    %c0_12 = arith.constant 0 : index
    %6 = vector.load %arg2[%c0_11, %c0_12] : memref<9x256xf32, #tpu.memory_space<vmem>>, vector<1x256xf32>
    %c1 = arith.constant 1 : index
    %c0_13 = arith.constant 0 : index
    %7 = vector.load %arg2[%c1, %c0_13] : memref<9x256xf32, #tpu.memory_space<vmem>>, vector<1x256xf32>
    %c2 = arith.constant 2 : index
    %c0_14 = arith.constant 0 : index
    %8 = vector.load %arg2[%c2, %c0_14] : memref<9x256xf32, #tpu.memory_space<vmem>>, vector<1x256xf32>
    %c3 = arith.constant 3 : index
    %c0_15 = arith.constant 0 : index
    %9 = vector.load %arg2[%c3, %c0_15] : memref<9x256xf32, #tpu.memory_space<vmem>>, vector<1x256xf32>
    %c5 = arith.constant 5 : index
    %c0_16 = arith.constant 0 : index
    %10 = vector.load %arg2[%c5, %c0_16] : memref<9x256xf32, #tpu.memory_space<vmem>>, vector<1x256xf32>
    %c6 = arith.constant 6 : index
    %c0_17 = arith.constant 0 : index
    %11 = vector.load %arg2[%c6, %c0_17] : memref<9x256xf32, #tpu.memory_space<vmem>>, vector<1x256xf32>
    %c7 = arith.constant 7 : index
    %c0_18 = arith.constant 0 : index
    %12 = vector.load %arg2[%c7, %c0_18] : memref<9x256xf32, #tpu.memory_space<vmem>>, vector<1x256xf32>
    %c8 = arith.constant 8 : index
    %c0_19 = arith.constant 0 : index
    %13 = vector.load %arg2[%c8, %c0_19] : memref<9x256xf32, #tpu.memory_space<vmem>>, vector<1x256xf32>
    %c0_20 = arith.constant 0 : index
    %c0_21 = arith.constant 0 : index
    %c0_22 = arith.constant 0 : index
    %14 = vector.load %arg1[%c0_20, %c0_21, %c0_22] : memref<2x8x256xf32, #tpu.memory_space<vmem>>, vector<1x8x256xf32>
    %15 = vector.shape_cast %14 : vector<1x8x256xf32> to vector<8x256xf32>
    %cst = arith.constant dense<0.000000e+00> : vector<24x256xf32>
    %16 = tpu.matmul %0, %15, %cst {dimension_numbers = #tpu.dot_dimension_numbers<[1], [0], [0], [1], [0, 0, 1, 1], [], []>} : vector<24x8xf32>, vector<8x256xf32>, vector<24x256xf32> -> vector<24x256xf32>
    %17 = vector.broadcast %1 : vector<24x1xf32> to vector<24x256xf32>
    %18 = arith.addf %16, %17 : vector<24x256xf32>
    %cst_23 = arith.constant 0.000000e+00 : f32
    %19 = vector.broadcast %cst_23 : f32 to vector<24x256xf32>
    %20 = arith.maximumf %18, %19 : vector<24x256xf32>
    %cst_24 = arith.constant dense<0.000000e+00> : vector<8x256xf32>
    %21 = tpu.matmul %2, %20, %cst_24 {dimension_numbers = #tpu.dot_dimension_numbers<[1], [0], [0], [1], [0, 0, 1, 1], [], []>} : vector<8x24xf32>, vector<24x256xf32>, vector<8x256xf32> -> vector<8x256xf32>
    %22 = vector.broadcast %3 : vector<8x1xf32> to vector<8x256xf32>
    %23 = arith.addf %21, %22 : vector<8x256xf32>
    %c17_i32 = arith.constant 17 : i32
    %24 = tpu.dynamic_rotate %23 by %c17_i32 dim 1 : vector<8x256xf32>, i32 -> vector<8x256xf32>
    %25 = vector.broadcast %6 : vector<1x256xf32> to vector<8x256xf32>
    %26 = arith.mulf %24, %25 : vector<8x256xf32>
    %c16_i32 = arith.constant 16 : i32
    %27 = tpu.dynamic_rotate %23 by %c16_i32 dim 1 : vector<8x256xf32>, i32 -> vector<8x256xf32>
    %28 = vector.broadcast %7 : vector<1x256xf32> to vector<8x256xf32>
    %29 = arith.mulf %27, %28 : vector<8x256xf32>
    %c15_i32 = arith.constant 15 : i32
    %30 = tpu.dynamic_rotate %23 by %c15_i32 dim 1 : vector<8x256xf32>, i32 -> vector<8x256xf32>
    %31 = vector.broadcast %8 : vector<1x256xf32> to vector<8x256xf32>
    %32 = arith.mulf %30, %31 : vector<8x256xf32>
    %c1_i32 = arith.constant 1 : i32
    %33 = tpu.dynamic_rotate %23 by %c1_i32 dim 1 : vector<8x256xf32>, i32 -> vector<8x256xf32>
    %34 = vector.broadcast %9 : vector<1x256xf32> to vector<8x256xf32>
    %35 = arith.mulf %33, %34 : vector<8x256xf32>
    %c255_i32 = arith.constant 255 : i32
    %36 = tpu.dynamic_rotate %23 by %c255_i32 dim 1 : vector<8x256xf32>, i32 -> vector<8x256xf32>
    %37 = vector.broadcast %10 : vector<1x256xf32> to vector<8x256xf32>
    %38 = arith.mulf %36, %37 : vector<8x256xf32>
    %c241_i32 = arith.constant 241 : i32
    %39 = tpu.dynamic_rotate %23 by %c241_i32 dim 1 : vector<8x256xf32>, i32 -> vector<8x256xf32>
    %40 = vector.broadcast %11 : vector<1x256xf32> to vector<8x256xf32>
    %41 = arith.mulf %39, %40 : vector<8x256xf32>
    %c240_i32 = arith.constant 240 : i32
    %42 = tpu.dynamic_rotate %23 by %c240_i32 dim 1 : vector<8x256xf32>, i32 -> vector<8x256xf32>
    %43 = vector.broadcast %12 : vector<1x256xf32> to vector<8x256xf32>
    %44 = arith.mulf %42, %43 : vector<8x256xf32>
    %c239_i32 = arith.constant 239 : i32
    %45 = tpu.dynamic_rotate %23 by %c239_i32 dim 1 : vector<8x256xf32>, i32 -> vector<8x256xf32>
    %46 = vector.broadcast %13 : vector<1x256xf32> to vector<8x256xf32>
    %47 = arith.mulf %45, %46 : vector<8x256xf32>
    %48 = tpu.concatenate %26, %29, %32, %35, %23, %38, %41, %44, %47 in 0 : vector<8x256xf32>, vector<8x256xf32>, vector<8x256xf32>, vector<8x256xf32>, vector<8x256xf32>, vector<8x256xf32>, vector<8x256xf32>, vector<8x256xf32>, vector<8x256xf32> -> vector<72x256xf32>
    %cst_25 = arith.constant dense<0.000000e+00> : vector<8x256xf32>
    %49 = tpu.matmul %4, %48, %cst_25 {dimension_numbers = #tpu.dot_dimension_numbers<[1], [0], [0], [1], [0, 0, 1, 1], [], []>} : vector<8x72xf32>, vector<72x256xf32>, vector<8x256xf32> -> vector<8x256xf32>
    %50 = vector.broadcast %5 : vector<8x1xf32> to vector<8x256xf32>
    %51 = arith.addf %49, %50 : vector<8x256xf32>
    %52 = arith.addf %51, %15 : vector<8x256xf32>
    %c0_26 = arith.constant 0 : index
    %c0_27 = arith.constant 0 : index
    %c0_28 = arith.constant 0 : index
    %53 = vector.load %arg9[%c0_26, %c0_27, %c0_28] : memref<2x8x256xf32, #tpu.memory_space<vmem>>, vector<1x8x256xf32>
    %54 = vector.shape_cast %53 : vector<1x8x256xf32> to vector<8x256xf32>
    %55 = vector.shape_cast %52 : vector<8x256xf32> to vector<1x8x256xf32>
    tpu.vector_store %arg9[%c0_26, %c0_27, %c0_28], %55 {strides = array<i32>} : memref<2x8x256xf32, #tpu.memory_space<vmem>>, vector<1x8x256xf32>,
    %c1_29 = arith.constant 1 : index
    %c0_30 = arith.constant 0 : index
    %c0_31 = arith.constant 0 : index
    %56 = vector.load %arg1[%c1_29, %c0_30, %c0_31] : memref<2x8x256xf32, #tpu.memory_space<vmem>>, vector<1x8x256xf32>
    %57 = vector.shape_cast %56 : vector<1x8x256xf32> to vector<8x256xf32>
    %cst_32 = arith.constant dense<0.000000e+00> : vector<24x256xf32>
    %58 = tpu.matmul %0, %57, %cst_32 {dimension_numbers = #tpu.dot_dimension_numbers<[1], [0], [0], [1], [0, 0, 1, 1], [], []>} : vector<24x8xf32>, vector<8x256xf32>, vector<24x256xf32> -> vector<24x256xf32>
    %59 = vector.broadcast %1 : vector<24x1xf32> to vector<24x256xf32>
    %60 = arith.addf %58, %59 : vector<24x256xf32>
    %cst_33 = arith.constant 0.000000e+00 : f32
    %61 = vector.broadcast %cst_33 : f32 to vector<24x256xf32>
    %62 = arith.maximumf %60, %61 : vector<24x256xf32>
    %cst_34 = arith.constant dense<0.000000e+00> : vector<8x256xf32>
    %63 = tpu.matmul %2, %62, %cst_34 {dimension_numbers = #tpu.dot_dimension_numbers<[1], [0], [0], [1], [0, 0, 1, 1], [], []>} : vector<8x24xf32>, vector<24x256xf32>, vector<8x256xf32> -> vector<8x256xf32>
    %64 = vector.broadcast %3 : vector<8x1xf32> to vector<8x256xf32>
    %65 = arith.addf %63, %64 : vector<8x256xf32>
    %c17_i32_35 = arith.constant 17 : i32
    %66 = tpu.dynamic_rotate %65 by %c17_i32_35 dim 1 : vector<8x256xf32>, i32 -> vector<8x256xf32>
    %67 = vector.broadcast %6 : vector<1x256xf32> to vector<8x256xf32>
    %68 = arith.mulf %66, %67 : vector<8x256xf32>
    %c16_i32_36 = arith.constant 16 : i32
    %69 = tpu.dynamic_rotate %65 by %c16_i32_36 dim 1 : vector<8x256xf32>, i32 -> vector<8x256xf32>
    %70 = vector.broadcast %7 : vector<1x256xf32> to vector<8x256xf32>
    %71 = arith.mulf %69, %70 : vector<8x256xf32>
    %c15_i32_37 = arith.constant 15 : i32
    %72 = tpu.dynamic_rotate %65 by %c15_i32_37 dim 1 : vector<8x256xf32>, i32 -> vector<8x256xf32>
    %73 = vector.broadcast %8 : vector<1x256xf32> to vector<8x256xf32>
    %74 = arith.mulf %72, %73 : vector<8x256xf32>
    %c1_i32_38 = arith.constant 1 : i32
    %75 = tpu.dynamic_rotate %65 by %c1_i32_38 dim 1 : vector<8x256xf32>, i32 -> vector<8x256xf32>
    %76 = vector.broadcast %9 : vector<1x256xf32> to vector<8x256xf32>
    %77 = arith.mulf %75, %76 : vector<8x256xf32>
    %c255_i32_39 = arith.constant 255 : i32
    %78 = tpu.dynamic_rotate %65 by %c255_i32_39 dim 1 : vector<8x256xf32>, i32 -> vector<8x256xf32>
    %79 = vector.broadcast %10 : vector<1x256xf32> to vector<8x256xf32>
    %80 = arith.mulf %78, %79 : vector<8x256xf32>
    %c241_i32_40 = arith.constant 241 : i32
    %81 = tpu.dynamic_rotate %65 by %c241_i32_40 dim 1 : vector<8x256xf32>, i32 -> vector<8x256xf32>
    %82 = vector.broadcast %11 : vector<1x256xf32> to vector<8x256xf32>
    %83 = arith.mulf %81, %82 : vector<8x256xf32>
    %c240_i32_41 = arith.constant 240 : i32
    %84 = tpu.dynamic_rotate %65 by %c240_i32_41 dim 1 : vector<8x256xf32>, i32 -> vector<8x256xf32>
    %85 = vector.broadcast %12 : vector<1x256xf32> to vector<8x256xf32>
    %86 = arith.mulf %84, %85 : vector<8x256xf32>
    %c239_i32_42 = arith.constant 239 : i32
    %87 = tpu.dynamic_rotate %65 by %c239_i32_42 dim 1 : vector<8x256xf32>, i32 -> vector<8x256xf32>
    %88 = vector.broadcast %13 : vector<1x256xf32> to vector<8x256xf32>
    %89 = arith.mulf %87, %88 : vector<8x256xf32>
    %90 = tpu.concatenate %68, %71, %74, %77, %65, %80, %83, %86, %89 in 0 : vector<8x256xf32>, vector<8x256xf32>, vector<8x256xf32>, vector<8x256xf32>, vector<8x256xf32>, vector<8x256xf32>, vector<8x256xf32>, vector<8x256xf32>, vector<8x256xf32> -> vector<72x256xf32>
    %cst_43 = arith.constant dense<0.000000e+00> : vector<8x256xf32>
    %91 = tpu.matmul %4, %90, %cst_43 {dimension_numbers = #tpu.dot_dimension_numbers<[1], [0], [0], [1], [0, 0, 1, 1], [], []>} : vector<8x72xf32>, vector<72x256xf32>, vector<8x256xf32> -> vector<8x256xf32>
    %92 = vector.broadcast %5 : vector<8x1xf32> to vector<8x256xf32>
    %93 = arith.addf %91, %92 : vector<8x256xf32>
    %94 = arith.addf %93, %57 : vector<8x256xf32>
    %c1_44 = arith.constant 1 : index
    %c0_45 = arith.constant 0 : index
    %c0_46 = arith.constant 0 : index
    %95 = vector.load %arg9[%c1_44, %c0_45, %c0_46] : memref<2x8x256xf32, #tpu.memory_space<vmem>>, vector<1x8x256xf32>
    %96 = vector.shape_cast %95 : vector<1x8x256xf32> to vector<8x256xf32>
    %97 = vector.shape_cast %94 : vector<8x256xf32> to vector<1x8x256xf32>
    tpu.vector_store %arg9[%c1_44, %c0_45, %c0_46], %97 {strides = array<i32>} : memref<2x8x256xf32, #tpu.memory_space<vmem>>, vector<1x8x256xf32>,
    return
  }
  func.func @transform_0(%arg0: i32) -> (i32, i32, i32) {
    %c0_i32 = arith.constant 0 : i32
    %c0_i32_0 = arith.constant 0 : i32
    %c0_i32_1 = arith.constant 0 : i32
    return %arg0, %c0_i32, %c0_i32_0 : i32, i32, i32
  }
  func.func @transform_1(%arg0: i32) -> (i32, i32) {
    %c0_i32 = arith.constant 0 : i32
    %c0_i32_0 = arith.constant 0 : i32
    %c0_i32_1 = arith.constant 0 : i32
    return %c0_i32, %c0_i32_0 : i32, i32
  }
  func.func @transform_2(%arg0: i32) -> (i32, i32) {
    %c0_i32 = arith.constant 0 : i32
    %c0_i32_0 = arith.constant 0 : i32
    %c0_i32_1 = arith.constant 0 : i32
    return %c0_i32, %c0_i32_0 : i32, i32
  }
  func.func @transform_3(%arg0: i32) -> (i32, i32) {
    %c0_i32 = arith.constant 0 : i32
    %c0_i32_0 = arith.constant 0 : i32
    %c0_i32_1 = arith.constant 0 : i32
    return %c0_i32, %c0_i32_0 : i32, i32
  }
  func.func @transform_4(%arg0: i32) -> (i32, i32) {
    %c0_i32 = arith.constant 0 : i32
    %c0_i32_0 = arith.constant 0 : i32
    %c0_i32_1 = arith.constant 0 : i32
    return %c0_i32, %c0_i32_0 : i32, i32
  }
  func.func @transform_5(%arg0: i32) -> (i32, i32) {
    %c0_i32 = arith.constant 0 : i32
    %c0_i32_0 = arith.constant 0 : i32
    %c0_i32_1 = arith.constant 0 : i32
    return %c0_i32, %c0_i32_0 : i32, i32
  }
  func.func @transform_6(%arg0: i32) -> (i32, i32) {
    %c0_i32 = arith.constant 0 : i32
    %c0_i32_0 = arith.constant 0 : i32
    %c0_i32_1 = arith.constant 0 : i32
    return %c0_i32, %c0_i32_0 : i32, i32
  }
  func.func @transform_7(%arg0: i32) -> (i32, i32) {
    %c0_i32 = arith.constant 0 : i32
    %c0_i32_0 = arith.constant 0 : i32
    %c0_i32_1 = arith.constant 0 : i32
    return %c0_i32, %c0_i32_0 : i32, i32
  }
  func.func @transform_8(%arg0: i32) -> (i32, i32, i32) {
    %c0_i32 = arith.constant 0 : i32
    %c0_i32_0 = arith.constant 0 : i32
    %c0_i32_1 = arith.constant 0 : i32
    return %arg0, %c0_i32, %c0_i32_0 : i32, i32, i32
  }
}

</mosaic_0001>

<bundles_post_ra>
// kernel: tpu_custom_call.1
= control target key start
LH: loop header
LB: loop body
LE: loop exit
PB: predicated region body
PF: predicated region fallthrough
CT: control target
= control target key end

     0   :  { %vm72_vm0 = vcmask 64512   ;;  %v913_v3 = vmov 0.0   ;;  %v914_v5 = vmov 0   ;;  %s1329_s0 = inlined_call_operand.vmem [shape: f32[2,8,256], index: 0, kind: input, shape index: {}]   ;;  %s1330_s1 = inlined_call_operand.vmem [shape: f32[9,256], index: 1, kind: input, shape index: {}]   ;;  %s1331_s2 = inlined_call_operand.vmem [shape: f32[24,8], index: 2, kind: input, shape index: {}]   ;;  %s1332_s3 = inlined_call_operand.vmem [shape: f32[24,1], index: 3, kind: input, shape index: {}]   ;;  %s1333_s4 = inlined_call_operand.vmem [shape: f32[8,24], index: 4, kind: input, shape index: {}]   ;;  %s1334_s5 = inlined_call_operand.vmem [shape: f32[8,1], index: 5, kind: input, shape index: {}]   ;;  %s1335_s6 = inlined_call_operand.vmem [shape: f32[8,72], index: 6, kind: input, shape index: {}]   ;;  %s1336_s7 = inlined_call_operand.vmem [shape: f32[8,1], index: 7, kind: input, shape index: {}]   ;;  %s1337_s8 = inlined_call_operand.hbm [shape: f32[2,8,256], index: 8, kind: output, shape index: {}]  }
   0x1   :  { %v973_v0 = vld [vmem:[%s1329_s0 + $0x8] sm:$0xff]  ;;  %v978_v1 = vld [vmem:[%s1329_s0] sm:$0xff]  ;;  %146 = vmatprep.mubr.f32.mxu1 %v913_v3  ;;  %887 = vset.pattern.permute.xlu0 %v914_v5  ;;  %v35_v6 = vld [vmem:[%s1332_s3 + $0x10] sm:$0xff] }
   0x2   :  { %v30_v2 = vld [vmem:[%s1331_s2] sm:$0xff]  ;;  %82 = vmatprep.subr.mxu1 %v973_v0 }
   0x3   :  { %v33_v4 = vld [vmem:[%s1332_s3] sm:$0xff]  ;;  %83 = vmatpush1.msra.mxu1 %v978_v1 }
   0x4   :  { %823 = vmatmul.mubr.msk.f32.vlgmr.msra.gmra.mrb[0].mxu1 %vm72_vm0, %v30_v2  ;;  %59 = vperm.xlu0 %887, %v33_v4  }
   0x5   :  { %13 = vsyncpa [#allocation3], 0  ;;  %152 = vmatprep.mubr.f32.mxu1 %v913_v3  ;;  %v31_v7 = vld [vmem:[%s1331_s2 + $0x8] sm:$0xff]  ;;  %888 = vset.pattern.permute.xlu1 %v914_v5  ;;  %v37_v9 = vld [vmem:[%s1334_s5] sm:$0xff]  ;;  %vm176_vm1 = vcmask 195584   ;;  %s917_s26 = smov 15   ;;  %v255_v62 = vlaneseq }
   0x6   :  { %v34_v8 = vld [vmem:[%s1332_s3 + $0x8] sm:$0xff]  ;;  %69 = vperm.xlu1 %888, %v35_v6   ;;  %486 = vmatprep.mubr.f32.mxu0 %v913_v3  ;;  %v32_v10 = vld [vmem:[%s1331_s2 + $0x10] sm:$0xff]  ;;  %v36_v34 = vld [vmem:[%s1333_s4] sm:$0xff]  ;;  %s916_s4 = smov 16   ;;  %s918_s27 = smov 1   ;;  %vm418_vm10 = vcmask 588800  }
   0x7   :  { %v1017_v35 = vld [vmem:[%s1329_s0 + $0x18] sm:$0xff]  ;;  %v1022_v36 = vld [vmem:[%s1329_s0 + $0x10] sm:$0xff]  ;;  %s915_s0 = smov 17   ;;  %s919_s28 = smov 127   ;;  %v262_v63 = vshrl.u32 %v255_v62, 7 }
   0x8   :  { %824 = vmatmul.mubr.msk.f32.gmra.mrb[2].mxu1 %vm72_vm0, %v31_v7  ;;  %64 = vperm.xlu0 %887, %v34_v8   ;;  %s920_s29 = smov 113   ;;  %s921_s30 = smov 112   ;;  %v40_v5 = vld [vmem:[%s1330_s1] ss:$8 sm:$0x3] }
   0x9   :  { %158 = vmatprep.mubr.f32.mxu1 %v913_v3  ;;  %s922_s9 = smov 111   ;;  %v1077_v4 = vsub.s32 0, %v262_v63  ;;  %v1082_v6 = vsub.s32 1, %v262_v63  ;;  %v816_v8 = vld [vmem:[%s1330_s1 + $0x1] ss:$8 sm:$0x3] }
   0xa   :  { %173 = vperm.xlu1 %888, %v37_v9  }
   0xc   :  { %825 = vmatmul.mubr.msk.f32.gmra.mrb[4].mxu1 %vm72_vm0, %v32_v10 }
   0xd   :  { %244 = vmatprep.mubr.f32.mxu1 %v913_v3 }
  0x83   :  { %v60_v11 = vpop.permute.xlu0 %59 }
  0x85   :  { %v70_v27 = vpop.permute.xlu1 %69 }
  0x87   :  { %v65_v15 = vpop.permute.xlu0 %64 }
  0x89   :  { %v1034_v37 = vpop.permute.xlu1 %173 }
  0xd7   :  { %v148_v12 = vpop.f32.mrb[0].mxu1 }
  0xd8   :  { %v150_v13 = vpop.f32.mrb[1].mxu1  ;;  %v149_v14 = vadd.f32 %v148_v12, %v60_v11  ;;  %v1096_v12 = vrot.slane %v40_v5, %v1082_v6 }
  0xd9   :  { %v151_v16 = vadd.f32 %v150_v13, %v60_v11  ;;  %v1099_v13 = vrot.slane %v816_v8, %v1082_v6 }
  0xda   :  { %v165_v21 = vmax.f32 %v149_v14, 0.0 }
  0xdb   :  { %v154_v17 = vpop.f32.mrb[2].mxu1  ;;  %v166_v23 = vmax.f32 %v151_v16, 0.0 }
  0xdc   :  { %v155_v18 = vadd.f32 %v154_v17, %v65_v15  ;;  %v156_v19 = vpop.f32.mrb[3].mxu1 }
  0xdd   :  { %v157_v20 = vadd.f32 %v156_v19, %v65_v15 }
  0xde   :  { %v167_v22 = vmax.f32 %v155_v18, 0.0 }
  0xdf   :  { %v168_v24 = vmax.f32 %v157_v20, 0.0  ;;  %v160_v25 = vpop.f32.mrb[4].mxu1 }
  0xe0   :  { %v837_v26 = vpack.c.bf16 %v167_v22, %v165_v21  ;;  %v162_v28 = vpop.f32.mrb[5].mxu1  ;;  %v161_v31 = vadd.f32 %v160_v25, %v70_v27  ;;  %v817_v22 = vld [vmem:[%s1330_s1 + $0x2] ss:$8 sm:$0x3] }
  0xe1   :  { %v835_v29 = vpack.c.bf16 %v168_v24, %v166_v23  ;;  %v163_v30 = vadd.f32 %v162_v28, %v70_v27 }
  0xe2   :  { %v169_v33 = vmax.f32 %v161_v31, 0.0  ;;  %v1124_v31 = vrot.slane %v817_v22, %v1082_v6 }
  0xe3   :  { %v170_v32 = vmax.f32 %v163_v30, 0.0  ;;  %836 = vmatprep.subr.bf16.mxu1 %v835_v29  ;;  %v1121_v30 = vrot.slane %v817_v22, %v1077_v4 }
  0xe4   :  { %838 = vmatpush1.bf16.msra.mxu1 %v837_v26  ;;  %v818_v26 = vld [vmem:[%s1330_s1 + $0x3] ss:$8 sm:$0x3] }
  0xe5   :  { %184 = vmatprep.subr.mxu1 %v170_v32  ;;  %v1128_v32 = vrot.slane %v818_v26, %v1077_v4 }
  0xe8   :  { %185 = vmatpush1.msra.mxu1 %v169_v33  ;;  %v1131_v33 = vrot.slane %v818_v26, %v1082_v6 }
  0xe9   :  { %826 = vmatmul.mubr.msk.f32.vlgmr.msra.gmra.mrb[6].mxu1 %vm176_vm1, %v36_v34  ;;  %500 = vmatprep.subr.mxu1 %v1017_v35 }
  0xea   :  { %501 = vmatpush1.msra.mxu1 %v1022_v36  ;;  %564 = vmatprep.mubr.f32.mxu1 %v913_v3 }
  0xed   :  { %830 = vmatmul.mubr.msk.f32.vlgmr.msra.gmra.mrb[8].mxu1 %vm72_vm0, %v30_v2  ;;  %v1075_v2 = vand.u32 127, %v255_v62  ;;  %v821_v62 = vld [vmem:[%s1330_s1 + $0x7] ss:$8 sm:$0x3] }
  0xee   :  { %570 = vmatprep.mubr.f32.mxu1 %v913_v3 }
  0xef   :  { %vm257_vm2 = vcmp.lt.s32.totalorder %v1075_v2, 17  ;;  %vm277_vm3 = vcmp.lt.s32.totalorder %v1075_v2, 16  ;;  %vm297_vm4 = vcmp.lt.s32.totalorder %v1075_v2, 15  ;;  %vm317_vm5 = vcmp.lt.s32.totalorder %v1075_v2, 1 }
  0xf0   :  { %vm337_vm6 = vcmp.lt.s32.totalorder %v1075_v2, 127  ;;  %vm357_vm7 = vcmp.lt.s32.totalorder %v1075_v2, 113  ;;  %vm377_vm8 = vcmp.lt.s32.totalorder %v1075_v2, 112  ;;  %vm397_vm9 = vcmp.lt.s32.totalorder %v1075_v2, 111 }
  0xf1   :  { %831 = vmatmul.mubr.msk.f32.gmra.mrb[10].mxu1 %vm72_vm0, %v31_v7 }
  0xf2   :  { %576 = vmatprep.mubr.f32.mxu1 %v913_v3 }
  0xf5   :  { %832 = vmatmul.mubr.msk.f32.gmra.mrb[12].mxu1 %vm72_vm0, %v32_v10  ;;  %v1089_v10 = vrot.slane %v40_v5, %v1077_v4 }
  0xf6   :  { %653 = vmatprep.mubr.f32.mxu1 %v913_v3 }
 0x1bc   :  { %v246_v38 = vpop.f32.mrb[6].mxu1 }
 0x1bd   :  { %v1037_v39 = vadd.f32 %v246_v38, %v1034_v37  ;;  %v248_v40 = vpop.f32.mrb[7].mxu1 }
 0x1be   :  { %v1040_v41 = vadd.f32 %v248_v40, %v1034_v37 }
 0x1bf   :  { %251 = vrot.lane.b32.xlu0 %v1037_v39, %s915_s0 }
 0x1c0   :  { %v566_v42 = vpop.f32.mrb[8].mxu1  ;;  %253 = vrot.lane.b32.xlu1 %v1040_v41, %s915_s0 }
 0x1c1   :  { %v568_v43 = vpop.f32.mrb[9].mxu1  ;;  %v567_v44 = vadd.f32 %v566_v42, %v60_v11 }
 0x1c2   :  { %v569_v45 = vadd.f32 %v568_v43, %v60_v11  ;;  %v1093_v11 = vrot.slane %v816_v8, %v1077_v4 }
 0x1c3   :  { %273 = vrot.lane.b32.xlu0 %v1037_v39, %s916_s4  ;;  %v583_v50 = vmax.f32 %v567_v44, 0.0 }
 0x1c4   :  { %v572_v46 = vpop.f32.mrb[10].mxu1  ;;  %275 = vrot.lane.b32.xlu1 %v1040_v41, %s916_s4  ;;  %v584_v52 = vmax.f32 %v569_v45, 0.0 }
 0x1c5   :  { %v573_v47 = vadd.f32 %v572_v46, %v65_v15  ;;  %v574_v48 = vpop.f32.mrb[11].mxu1 }
 0x1c6   :  { %v575_v49 = vadd.f32 %v574_v48, %v65_v15 }
 0x1c7   :  { %v585_v51 = vmax.f32 %v573_v47, 0.0  ;;  %293 = vrot.lane.b32.xlu0 %v1037_v39, %s917_s26 }
 0x1c8   :  { %v586_v53 = vmax.f32 %v575_v49, 0.0  ;;  %v578_v54 = vpop.f32.mrb[12].mxu1  ;;  %295 = vrot.lane.b32.xlu1 %v1040_v41, %s917_s26 }
 0x1c9   :  { %v857_v55 = vpack.c.bf16 %v585_v51, %v583_v50  ;;  %v580_v56 = vpop.f32.mrb[13].mxu1  ;;  %v579_v59 = vadd.f32 %v578_v54, %v70_v27 }
 0x1ca   :  { %v855_v57 = vpack.c.bf16 %v586_v53, %v584_v52  ;;  %v581_v58 = vadd.f32 %v580_v56, %v70_v27 }
 0x1cb   :  { %313 = vrot.lane.b32.xlu0 %v1037_v39, %s918_s27  ;;  %v587_v61 = vmax.f32 %v579_v59, 0.0 }
 0x1cc   :  { %v588_v60 = vmax.f32 %v581_v58, 0.0  ;;  %856 = vmatprep.subr.bf16.mxu1 %v855_v57  ;;  %315 = vrot.lane.b32.xlu1 %v1040_v41, %s918_s27 }
 0x1cd   :  { %858 = vmatpush1.bf16.msra.mxu1 %v857_v55 }
 0x1ce   :  { %593 = vmatprep.subr.mxu1 %v588_v60  ;;  %v820_v60 = vld [vmem:[%s1330_s1 + $0x6] ss:$8 sm:$0x3] }
 0x1cf   :  { %333 = vrot.lane.b32.xlu0 %v1037_v39, %s919_s28  ;;  %v1171_v8 = vrot.slane %v820_v60, %v1077_v4 }
 0x1d0   :  { %335 = vrot.lane.b32.xlu1 %v1040_v41, %s919_s28 }
 0x1d1   :  { %594 = vmatpush1.msra.mxu1 %v587_v61 }
 0x1d2   :  { %833 = vmatmul.mubr.msk.f32.vlgmr.msra.gmra.mrb[14].mxu1 %vm176_vm1, %v36_v34  ;;  %v819_v34 = vld [vmem:[%s1330_s1 + $0x5] ss:$8 sm:$0x3] }
 0x1d3   :  { %353 = vrot.lane.b32.xlu0 %v1037_v39, %s920_s29  ;;  %v1146_v46 = vrot.slane %v819_v34, %v1077_v4  ;;  %v1149_v47 = vrot.slane %v819_v34, %v1082_v6 }
 0x1d4   :  { %355 = vrot.lane.b32.xlu1 %v1040_v41, %s920_s29 }
 0x1d7   :  { %373 = vrot.lane.b32.xlu0 %v1037_v39, %s921_s30 }
 0x1d8   :  { %375 = vrot.lane.b32.xlu1 %v1040_v41, %s921_s30 }
 0x1db   :  { %393 = vrot.lane.b32.xlu0 %v1037_v39, %s922_s9 }
 0x1dc   :  { %395 = vrot.lane.b32.xlu1 %v1040_v41, %s922_s9 }
 0x231   :  { %v252_v7 = vpop.permute.xlu0 %251 }
 0x232   :  { %v254_v9 = vpop.permute.xlu1 %253 }
 0x233   :  { %v258_v14 = vsel %vm257_vm2, %v252_v7, %v254_v9  ;;  %v259_v15 = vsel %vm257_vm2, %v254_v9, %v252_v7  ;;  %v1174_v9 = vrot.slane %v820_v60, %v1082_v6 }
 0x234   :  { %v271_v20 = vmul.f32 %v1089_v10, %v259_v15  ;;  %v272_v23 = vmul.f32 %v1096_v12, %v258_v14  ;;  %v1178_v14 = vrot.slane %v821_v62, %v1077_v4  ;;  %v1181_v15 = vrot.slane %v821_v62, %v1082_v6 }
 0x235   :  { %v274_v16 = vpop.permute.xlu0 %273 }
 0x236   :  { %v276_v17 = vpop.permute.xlu1 %275 }
 0x237   :  { %v278_v18 = vsel %vm277_vm3, %v274_v16, %v276_v17  ;;  %v279_v19 = vsel %vm277_vm3, %v276_v17, %v274_v16 }
 0x238   :  { %v291_v21 = vmul.f32 %v1093_v11, %v279_v19  ;;  %v292_v24 = vmul.f32 %v1099_v13, %v278_v18 }
 0x239   :  { %v294_v25 = vpop.permute.xlu0 %293 }
 0x23a   :  { %v296_v27 = vpop.permute.xlu1 %295  ;;  %v839_v28 = vpack.c.bf16 %v292_v24, %v272_v23  ;;  %v841_v29 = vpack.c.bf16 %v291_v21, %v271_v20 }
 0x23b   :  { %v298_v38 = vsel %vm297_vm4, %v294_v25, %v296_v27  ;;  %v299_v40 = vsel %vm297_vm4, %v296_v27, %v294_v25 }
 0x23c   :  { %840 = vmatprep.subr.bf16.mxu0 %v839_v28  ;;  %v311_v48 = vmul.f32 %v1121_v30, %v299_v40  ;;  %v312_v49 = vmul.f32 %v1124_v31, %v298_v38 }
 0x23d   :  { %842 = vmatpush1.bf16.msra.mxu0 %v841_v29  ;;  %v314_v42 = vpop.permute.xlu0 %313 }
 0x23e   :  { %v316_v43 = vpop.permute.xlu1 %315 }
 0x23f   :  { %v318_v44 = vsel %vm317_vm5, %v314_v42, %v316_v43  ;;  %v319_v45 = vsel %vm317_vm5, %v316_v43, %v314_v42  ;;  %v1214_v43 = vld [vmem:[%s1335_s6] sm:$0xff] }
 0x240   :  { %v331_v50 = vmul.f32 %v1128_v32, %v319_v45  ;;  %v332_v51 = vmul.f32 %v1131_v33, %v318_v44 }
 0x241   :  { %v334_v52 = vpop.permute.xlu0 %333 }
 0x242   :  { %v336_v53 = vpop.permute.xlu1 %335  ;;  %v843_v54 = vpack.c.bf16 %v332_v51, %v312_v49  ;;  %v845_v55 = vpack.c.bf16 %v331_v50, %v311_v48 }
 0x243   :  { %v338_v56 = vsel %vm337_vm6, %v334_v52, %v336_v53  ;;  %v339_v57 = vsel %vm337_vm6, %v336_v53, %v334_v52 }
 0x244   :  { %v351_v58 = vmul.f32 %v1146_v46, %v338_v56  ;;  %v352_v59 = vmul.f32 %v1149_v47, %v339_v57  ;;  %844 = vmatprep.subr.bf16.mxu0 %v843_v54 }
 0x245   :  { %846 = vmatpush1.bf16.msra.mxu0 %v845_v55  ;;  %v354_v61 = vpop.permute.xlu0 %353 }
 0x246   :  { %v356_v63 = vpop.permute.xlu1 %355  ;;  %v847_v5 = vpack.c.bf16 %v352_v59, %v1040_v41  ;;  %v849_v7 = vpack.c.bf16 %v351_v58, %v1037_v39  ;;  %v822_v41 = vld [vmem:[%s1330_s1 + $0x10] ss:$8 sm:$0x3] }
 0x247   :  { %v358_v39 = vsel %vm357_vm7, %v354_v61, %v356_v63  ;;  %v359_v16 = vsel %vm357_vm7, %v356_v63, %v354_v61  ;;  %v1196_v21 = vrot.slane %v822_v41, %v1082_v6  ;;  %v1203_v34 = vrot.slane %v822_v41, %v1077_v4 }
 0x248   :  { %848 = vmatprep.subr.bf16.mxu0 %v847_v5  ;;  %v371_v22 = vmul.f32 %v1171_v8, %v358_v39  ;;  %v372_v23 = vmul.f32 %v1174_v9, %v359_v16 }
 0x249   :  { %850 = vmatpush1.bf16.msra.mxu0 %v849_v7  ;;  %v374_v17 = vpop.permute.xlu0 %373 }
 0x24a   :  { %v376_v18 = vpop.permute.xlu1 %375 }
 0x24b   :  { %v378_v19 = vsel %vm377_vm8, %v374_v17, %v376_v18  ;;  %v379_v20 = vsel %vm377_vm8, %v376_v18, %v374_v17 }
 0x24c   :  { %v391_v24 = vmul.f32 %v1178_v14, %v378_v19  ;;  %v392_v25 = vmul.f32 %v1181_v15, %v379_v20 }
 0x24d   :  { %v394_v26 = vpop.permute.xlu0 %393 }
 0x24e   :  { %v396_v27 = vpop.permute.xlu1 %395  ;;  %v851_v28 = vpack.c.bf16 %v392_v25, %v372_v23  ;;  %v853_v29 = vpack.c.bf16 %v391_v24, %v371_v22 }
 0x24f   :  { %v399_v38 = vsel %vm397_vm9, %v396_v27, %v394_v26  ;;  %v398_v6 = vsel %vm397_vm9, %v394_v26, %v396_v27 }
 0x250   :  { %v412_v40 = vmul.f32 %v1196_v21, %v399_v38  ;;  %852 = vmatprep.subr.bf16.mxu0 %v851_v28  ;;  %v411_v42 = vmul.f32 %v1203_v34, %v398_v6 }
 0x251   :  { %854 = vmatpush1.bf16.msra.mxu0 %v853_v29 }
 0x252   :  { %438 = vmatprep.subr.mxu0 %v412_v40 }
 0x255   :  { %439 = vmatpush1.msra.mxu0 %v411_v42 }
 0x256   :  { %827 = vmatmul.mubr.msk.f32.vlgmr.msra.gmra.mrb[0].mxu0 %vm418_vm10, %v1214_v43 }
 0x257   :  { %788 = vmatprep.mubr.f32.mxu0 %v913_v3  ;;  %v39_v3 = vld [vmem:[%s1336_s7] sm:$0xff]  ;;  %s923_s7 = smov [#allocation2]  }
 0x258   :  { %s805_s25 = sshll.u32 %s923_s7, 4  ;;  %s806_s25 = int_to_ptr.vmem [resolvable:$true] %s805_s25 }
 0x259   :  { %p894_p1 = scmp.lt.s32.totalorder %s806_s25, %s806_s25 }
 0x2a5   :  { %v655_v4 = vpop.f32.mrb[14].mxu1 }
 0x2a6   :  { %v1220_v44 = vadd.f32 %v655_v4, %v1034_v37  ;;  %v657_v45 = vpop.f32.mrb[15].mxu1 }
 0x2a7   :  { %v1223_v48 = vadd.f32 %v657_v45, %v1034_v37 }
 0x2a8   :  { %660 = vrot.lane.b32.xlu0 %v1220_v44, %s915_s0 }
 0x2a9   :  { %662 = vrot.lane.b32.xlu1 %v1223_v48, %s915_s0  ;;  %s889_s0 = scalar_lea.vmem %s806_s25, 512 }
 0x2aa   :  { %p890_p0 = scmp.ne.s32.totalorder %s806_s25, %s889_s0  ;;  %p895_p2 = scmp.lt.s32.totalorder %s889_s0, %s889_s0 }
 0x2ac   :  { %668 = vrot.lane.b32.xlu0 %v1220_v44, %s916_s4  ;;  %p896_p3 = por %p895_p2, %p894_p1 }
 0x2ad   :  { %670 = vrot.lane.b32.xlu1 %v1223_v48, %s916_s4 }
 0x2ae   :  { %p897_p4 = pnand %p896_p3, %p890_p0 }
 0x2b0   :  { %676 = vrot.lane.b32.xlu0 %v1220_v44, %s917_s26 }
 0x2b1   :  { %678 = vrot.lane.b32.xlu1 %v1223_v48, %s917_s26 }
 0x2b4   :  { %684 = vrot.lane.b32.xlu0 %v1220_v44, %s918_s27 }
 0x2b5   :  { %686 = vrot.lane.b32.xlu1 %v1223_v48, %s918_s27 }
 0x2b8   :  { %692 = vrot.lane.b32.xlu0 %v1220_v44, %s919_s28 }
 0x2b9   :  { %694 = vrot.lane.b32.xlu1 %v1223_v48, %s919_s28 }
 0x2bc   :  { %700 = vrot.lane.b32.xlu0 %v1220_v44, %s920_s29 }
 0x2bd   :  { %702 = vrot.lane.b32.xlu1 %v1223_v48, %s920_s29 }
 0x2c0   :  { %708 = vrot.lane.b32.xlu0 %v1220_v44, %s921_s30 }
 0x2c1   :  { %710 = vrot.lane.b32.xlu1 %v1223_v48, %s921_s30 }
 0x2c4   :  { %716 = vrot.lane.b32.xlu0 %v1220_v44, %s922_s9 }
 0x2c5   :  { %718 = vrot.lane.b32.xlu1 %v1223_v48, %s922_s9 }
 0x2c8   :  { %415 = vperm.xlu0 %887, %v39_v3  }
 0x31a   :  { %v661_v37 = vpop.permute.xlu0 %660 }
 0x31b   :  { %v663_v49 = vpop.permute.xlu1 %662 }
 0x31c   :  { %v664_v50 = vsel %vm257_vm2, %v661_v37, %v663_v49  ;;  %v665_v51 = vsel %vm257_vm2, %v663_v49, %v661_v37 }
 0x31d   :  { %v666_v56 = vmul.f32 %v665_v51, %v1089_v10  ;;  %v667_v57 = vmul.f32 %v664_v50, %v1096_v12 }
 0x31e   :  { %v669_v52 = vpop.permute.xlu0 %668 }
 0x31f   :  { %v671_v53 = vpop.permute.xlu1 %670 }
 0x320   :  { %v672_v54 = vsel %vm277_vm3, %v669_v52, %v671_v53  ;;  %v673_v55 = vsel %vm277_vm3, %v671_v53, %v669_v52 }
 0x321   :  { %v674_v58 = vmul.f32 %v673_v55, %v1093_v11  ;;  %v675_v59 = vmul.f32 %v672_v54, %v1099_v13 }
 0x322   :  { %v677_v60 = vpop.permute.xlu0 %676 }
 0x323   :  { %v861_v61 = vpack.c.bf16 %v674_v58, %v666_v56  ;;  %v679_v62 = vpop.permute.xlu1 %678  ;;  %v859_v63 = vpack.c.bf16 %v675_v59, %v667_v57 }
 0x324   :  { %v680_v5 = vsel %vm297_vm4, %v677_v60, %v679_v62  ;;  %v681_v7 = vsel %vm297_vm4, %v679_v62, %v677_v60 }
 0x325   :  { %860 = vmatprep.subr.bf16.mxu0 %v859_v63  ;;  %v682_v13 = vmul.f32 %v681_v7, %v1121_v30  ;;  %v683_v39 = vmul.f32 %v680_v5, %v1124_v31 }
 0x326   :  { %862 = vmatpush1.bf16.msra.mxu0 %v861_v61  ;;  %v685_v41 = vpop.permute.xlu0 %684 }
 0x327   :  { %v687_v10 = vpop.permute.xlu1 %686 }
 0x328   :  { %v688_v12 = vsel %vm317_vm5, %v685_v41, %v687_v10  ;;  %v689_v11 = vsel %vm317_vm5, %v687_v10, %v685_v41 }
 0x329   :  { %v690_v16 = vmul.f32 %v689_v11, %v1128_v32  ;;  %v691_v17 = vmul.f32 %v688_v12, %v1131_v33  ;;  %v488_v18 = vpop.f32.mrb[0].mxu0 }
 0x32a   :  { %v693_v19 = vpop.permute.xlu0 %692  ;;  %v490_v20 = vpop.f32.mrb[1].mxu0 }
 0x32b   :  { %v865_v22 = vpack.c.bf16 %v690_v16, %v682_v13  ;;  %v695_v23 = vpop.permute.xlu1 %694  ;;  %v863_v24 = vpack.c.bf16 %v691_v17, %v683_v39 }
 0x32c   :  { %v696_v25 = vsel %vm337_vm6, %v693_v19, %v695_v23  ;;  %v697_v26 = vsel %vm337_vm6, %v695_v23, %v693_v19 }
 0x32d   :  { %v698_v30 = vmul.f32 %v696_v25, %v1146_v46  ;;  %v699_v31 = vmul.f32 %v697_v26, %v1149_v47  ;;  %864 = vmatprep.subr.bf16.mxu0 %v863_v24 }
 0x32e   :  { %866 = vmatpush1.bf16.msra.mxu0 %v865_v22  ;;  %v701_v32 = vpop.permute.xlu0 %700 }
 0x32f   :  { %v869_v33 = vpack.c.bf16 %v698_v30, %v1220_v44  ;;  %v703_v27 = vpop.permute.xlu1 %702  ;;  %v867_v28 = vpack.c.bf16 %v699_v31, %v1223_v48 }
 0x330   :  { %v704_v29 = vsel %vm357_vm7, %v701_v32, %v703_v27  ;;  %v705_v38 = vsel %vm357_vm7, %v703_v27, %v701_v32 }
 0x331   :  { %868 = vmatprep.subr.bf16.mxu0 %v867_v28  ;;  %v706_v42 = vmul.f32 %v704_v29, %v1171_v8  ;;  %v707_v4 = vmul.f32 %v705_v38, %v1174_v9 }
 0x332   :  { %870 = vmatpush1.bf16.msra.mxu0 %v869_v33  ;;  %v709_v6 = vpop.permute.xlu0 %708 }
 0x333   :  { %v711_v46 = vpop.permute.xlu1 %710 }
 0x334   :  { %v712_v47 = vsel %vm377_vm8, %v709_v6, %v711_v46  ;;  %v713_v40 = vsel %vm377_vm8, %v711_v46, %v709_v6 }
 0x335   :  { %v714_v44 = vmul.f32 %v712_v47, %v1178_v14  ;;  %v715_v45 = vmul.f32 %v713_v40, %v1181_v15 }
 0x336   :  { %v717_v48 = vpop.permute.xlu0 %716 }
 0x337   :  { %v873_v3 = vpack.c.bf16 %v714_v44, %v706_v42  ;;  %v719_v37 = vpop.permute.xlu1 %718  ;;  %v871_v49 = vpack.c.bf16 %v715_v45, %v707_v4 }
 0x338   :  { %v721_v50 = vsel %vm397_vm9, %v719_v37, %v717_v48  ;;  %v720_v51 = vsel %vm397_vm9, %v717_v48, %v719_v37 }
 0x339   :  { %v723_v52 = vmul.f32 %v721_v50, %v1196_v21  ;;  %872 = vmatprep.subr.bf16.mxu0 %v871_v49  ;;  %v722_v8 = vmul.f32 %v720_v51, %v1203_v34 }
 0x33a   :  { %874 = vmatpush1.bf16.msra.mxu0 %v873_v3 }
 0x33b   :  { %740 = vmatprep.subr.mxu0 %v723_v52 }
 0x33e   :  { %741 = vmatpush1.msra.mxu0 %v722_v8 }
 0x33f   :  { %834 = vmatmul.mubr.msk.f32.vlgmr.msra.gmra.mrb[2].mxu0 %vm418_vm10, %v1214_v43 }
 0x347   :  { %v416_v9 = vpop.permute.xlu0 %415 }
 0x348   :  { %v489_v14 = vadd.f32 %v488_v18, %v416_v9  ;;  %v491_v15 = vadd.f32 %v490_v20, %v416_v9 }
 0x34a   :  { %v493_v53 = vadd.f32 %v489_v14, %v978_v1  ;;  %v494_v54 = vadd.f32 %v491_v15, %v973_v0 }
 0x34c   :  { %495 = vst [vmem:[#allocation2] sm:$0xff] %v493_v53  ;;  %496 = vst [vmem:[#allocation2 + $0x8] sm:$0xff] %v494_v54 }
 0x412   :  { %v790_v2 = vpop.f32.mrb[2].mxu0 }
 0x413   :  { %v791_v21 = vadd.f32 %v790_v2, %v416_v9  ;;  %v792_v55 = vpop.f32.mrb[3].mxu0 }
 0x414   :  { %v793_v56 = vadd.f32 %v792_v55, %v416_v9 }
 0x415   :  { %v795_v34 = vadd.f32 %v1022_v36, %v791_v21 }
 0x416   :  { %v796_v57 = vadd.f32 %v1017_v35, %v793_v56 }
 0x417   :  { %798 = vst [vmem:[#allocation2 + $0x10] sm:$0xff] %v795_v34 }
 0x418   :  { %799 = vst [vmem:[#allocation2 + $0x18] sm:$0xff] %v796_v57 }
 0x419   :  { %900 = shalt.err (!%p897_p4)
}
 0x41a   :  { %s901_s28 = scalar_lea.hbm %s1337_s8, 512 }
 0x41b   :  { %p902_p5 = scmp.ne.s32.totalorder %s1337_s8, %s901_s28  ;;  %p905_p6 = scmp.lt.u32.totalorder %s901_s28, %s1337_s8 }
 0x41d   :  { %p907_p7 = pnand %p905_p6, %p902_p5 }
 0x41f   :  { %910 = shalt.err (!%p907_p7)
}
 0x420   :  { %s924_s11 = smov 256  }
 0x421   :  { %811 = dma.vmem_to_hbm [thread:$0]  %s806_s25, 512, %s1337_s8, [#allocation3], %s924_s11, %s924_s11, %s916_s4  }
 0x422   :  { %911 = dma.done.wait [#allocation3], 512  }
 0x423   :  { %912 = vsyncadd [#allocation3], 4294966784 }
 0x424   :  { %815 = vsyncpa [#allocation3], 1 }

</bundles_post_ra>
